<compile_context>
chip_gen: v7x
topology: tpu7x:2x2x1
jax: 0.10.0
libtpu: 0.0.40
codegen_flags: <defaults>
</compile_context>

<pallas_src>
import functools

import jax
import jax.numpy as jnp
from jax.experimental import pallas as pl
from jax.experimental.pallas import tpu as pltpu


def _round_up(a, b):
    return (a + b - 1) // b * b


def _ffn_kernel(x_ref, w1_ref, b1_ref, w2_ref, b2_ref, gamma_ref, beta_ref,
                o_ref, *, eps, d_in):
    # x tile: (tile_m, d_in_p); W1: (d_in_p, d_hid_p) bf16; W2: (d_hid_p, d_in_p) bf16.
    x_f32 = x_ref[...].astype(jnp.float32)          # residual kept in f32

    # first conv1d(k=1) == linear: bf16 operands, f32 accumulation on the MXU
    h = jnp.dot(x_ref[...].astype(jnp.bfloat16), w1_ref[...],
                preferred_element_type=jnp.float32) + b1_ref[...]
    h = jnp.maximum(h, 0.0)                          # ReLU in f32 (VPU)

    # second conv1d(k=1) == linear
    y = jnp.dot(h.astype(jnp.bfloat16), w2_ref[...],
                preferred_element_type=jnp.float32) + b2_ref[...]

    # dropout(p=0.1) is identity at inference time; residual add
    y = y + x_f32

    # LayerNorm over the *real* d_in channels.  Padded lanes are zero already, but we mask
    # explicitly and divide by the true d_in so padding can never change the statistics.
    d_in_p = y.shape[-1]
    if d_in_p != d_in:
        mask = jax.lax.broadcasted_iota(jnp.int32, y.shape, 1) < d_in
        y = jnp.where(mask, y, 0.0)
    inv_n = jnp.float32(1.0 / d_in)
    mean = jnp.sum(y, axis=-1, keepdims=True) * inv_n
    cent = y - mean
    if d_in_p != d_in:
        cent = jnp.where(mask, cent, 0.0)
    var = jnp.sum(cent * cent, axis=-1, keepdims=True) * inv_n
    yn = cent * jax.lax.rsqrt(var + eps)
    out = yn * gamma_ref[...] + beta_ref[...]

    o_ref[...] = out.astype(o_ref.dtype)


def positionwise_ffn(x, w1, b1, w2, b2, gamma, beta, *, eps=1e-5, tile_m=256):
    """x: (B, L, d_in). w1: (d_in, d_hid), w2: (d_hid, d_in). Returns (B, L, d_in)."""
    B, L, d_in = x.shape
    d_hid = w1.shape[1]
    M = B * L

    # Big M tiles (amortize per-step overhead, fill the MXU); lane-dense feature dims.
    tile_m = min(tile_m, _round_up(M, 8))
    m_pad = _round_up(M, tile_m)
    d_in_p = _round_up(d_in, 128)
    d_hid_p = _round_up(d_hid, 128)

    f32 = jnp.float32
    bf16 = jnp.bfloat16

    x2 = x.reshape(M, d_in)
    if (m_pad, d_in_p) != (M, d_in):
        x2 = jnp.zeros((m_pad, d_in_p), x.dtype).at[:M, :d_in].set(x2)

    def _pad2(a, shape, dtype):
        a = a.astype(dtype)
        if a.shape == shape:
            return a
        return jnp.zeros(shape, dtype).at[:a.shape[0], :a.shape[1]].set(a)

    w1_p = _pad2(w1, (d_in_p, d_hid_p), bf16)
    w2_p = _pad2(w2, (d_hid_p, d_in_p), bf16)
    b1_p = _pad2(b1.reshape(1, -1), (1, d_hid_p), f32)
    b2_p = _pad2(b2.reshape(1, -1), (1, d_in_p), f32)
    gamma_p = _pad2(gamma.reshape(1, -1), (1, d_in_p), f32)
    beta_p = _pad2(beta.reshape(1, -1), (1, d_in_p), f32)

    grid = (m_pad // tile_m,)

    itemsize = jnp.dtype(x.dtype).itemsize
    flops = 4 * m_pad * d_in_p * d_hid_p                      # two matmuls, 2 flops per MAC
    bytes_accessed = (2 * m_pad * d_in_p * itemsize           # x in + out
                      + (w1_p.size + w2_p.size) * 2           # bf16 weights
                      + (b1_p.size + b2_p.size + gamma_p.size + beta_p.size) * 4)

    out = pl.pallas_call(
        functools.partial(_ffn_kernel, eps=eps, d_in=d_in),
        out_shape=jax.ShapeDtypeStruct((m_pad, d_in_p), x.dtype),
        grid_spec=pltpu.PrefetchScalarGridSpec(
            num_scalar_prefetch=0,
            grid=grid,
            in_specs=[
                pl.BlockSpec((tile_m, d_in_p), lambda i: (i, 0)),     # x rows
                pl.BlockSpec((d_in_p, d_hid_p), lambda i: (0, 0)),    # W1 (bf16, resident)
                pl.BlockSpec((1, d_hid_p), lambda i: (0, 0)),         # b1
                pl.BlockSpec((d_hid_p, d_in_p), lambda i: (0, 0)),    # W2 (bf16, resident)
                pl.BlockSpec((1, d_in_p), lambda i: (0, 0)),          # b2
                pl.BlockSpec((1, d_in_p), lambda i: (0, 0)),          # gamma
                pl.BlockSpec((1, d_in_p), lambda i: (0, 0)),          # beta
            ],
            out_specs=pl.BlockSpec((tile_m, d_in_p), lambda i: (i, 0)),
        ),
        compiler_params=pltpu.CompilerParams(
            dimension_semantics=("parallel",),
            vmem_limit_bytes=64 * 1024 * 1024),
        cost_estimate=pl.CostEstimate(
            flops=int(flops),
            transcendentals=int(m_pad),
            bytes_accessed=int(bytes_accessed)),
    )(x2, w1_p, b1_p, w2_p, b2_p, gamma_p, beta_p)

    if (m_pad, d_in_p) != (M, d_in):
        out = out[:M, :d_in]
    return out.reshape(B, L, d_in)


def _reference(x, w1, b1, w2, b2, gamma, beta, eps=1e-5):
    h = jnp.maximum(jnp.einsum("bld,dh->blh", x, w1) + b1, 0.0)
    y = jnp.einsum("blh,hd->bld", h, w2) + b2 + x
    mean = jnp.mean(y, axis=-1, keepdims=True)
    var = jnp.mean((y - mean) ** 2, axis=-1, keepdims=True)
    return (y - mean) / jnp.sqrt(var + eps) * gamma + beta


if __name__ == "__main__":
    B, L = 2, 8
    d_in, d_hid = 32, 64

    key = jax.random.PRNGKey(0)
    kx, k1, kb1, k2, kb2 = jax.random.split(key, 5)

    x = jax.random.normal(kx, (B, L, d_in), dtype=jnp.float32)

    # Deterministic synthetic parameters.  PyTorch conv1d weight w_1.weight has shape
    # (d_hid, d_in, 1); here w1 is stored transposed as (d_in, d_hid), likewise w2.
    bound1 = 1.0 / jnp.sqrt(d_in)
    bound2 = 1.0 / jnp.sqrt(d_hid)
    w1 = jax.random.uniform(k1, (d_in, d_hid), minval=-bound1, maxval=bound1)
    b1 = jax.random.uniform(kb1, (d_hid,), minval=-bound1, maxval=bound1)
    w2 = jax.random.uniform(k2, (d_hid, d_in), minval=-bound2, maxval=bound2)
    b2 = jax.random.uniform(kb2, (d_in,), minval=-bound2, maxval=bound2)
    gamma = jnp.ones((d_in,), dtype=jnp.float32)   # LayerNorm default init
    beta = jnp.zeros((d_in,), dtype=jnp.float32)

    out = positionwise_ffn(x, w1, b1, w2, b2, gamma, beta)
    out = jax.block_until_ready(out)

    ref = _reference(x, w1, b1, w2, b2, gamma, beta)
    assert out.shape == (B, L, d_in)
    # bf16 matmul operands (f32 accumulation) -> slightly looser tolerance vs f32 reference.
    assert jnp.allclose(out, ref, atol=3e-2, rtol=3e-2), "mismatch vs JAX reference"

    print("KERNEL_OK")
</pallas_src>

<mosaic_0001>
module attributes {stable_mosaic.version = 11 : i64} {
  func.func @_ffn_kernel(%arg0: i32, %arg1: memref<16x128xf32, #tpu.memory_space<vmem>>, %arg2: memref<128x128xbf16, #tpu.memory_space<vmem>>, %arg3: memref<1x128xf32, #tpu.memory_space<vmem>>, %arg4: memref<128x128xbf16, #tpu.memory_space<vmem>>, %arg5: memref<1x128xf32, #tpu.memory_space<vmem>>, %arg6: memref<1x128xf32, #tpu.memory_space<vmem>>, %arg7: memref<1x128xf32, #tpu.memory_space<vmem>>, %arg8: memref<16x128xf32, #tpu.memory_space<vmem>>) attributes {dimension_semantics = [#tpu.dimension_semantics<parallel>], iteration_bounds = array<i64: 1>, scalar_prefetch = 0 : i64, scratch_operands = 0 : i64, tpu.core_type = #tpu.core_type<tc>, window_params = [{transform_indices = @transform_0, window_bounds = array<i64: 16, 128>}, {pipeline_mode = #tpu.pipeline_mode<synchronous>, transform_indices = @transform_1, window_bounds = array<i64: 128, 128>}, {pipeline_mode = #tpu.pipeline_mode<synchronous>, transform_indices = @transform_2, window_bounds = array<i64: 1, 128>}, {pipeline_mode = #tpu.pipeline_mode<synchronous>, transform_indices = @transform_3, window_bounds = array<i64: 128, 128>}, {pipeline_mode = #tpu.pipeline_mode<synchronous>, transform_indices = @transform_4, window_bounds = array<i64: 1, 128>}, {pipeline_mode = #tpu.pipeline_mode<synchronous>, transform_indices = @transform_5, window_bounds = array<i64: 1, 128>}, {pipeline_mode = #tpu.pipeline_mode<synchronous>, transform_indices = @transform_6, window_bounds = array<i64: 1, 128>}, {transform_indices = @transform_7, window_bounds = array<i64: 16, 128>}]} {
    %c0 = arith.constant 0 : index
    %c0_0 = arith.constant 0 : index
    %0 = vector.load %arg1[%c0, %c0_0] : memref<16x128xf32, #tpu.memory_space<vmem>>, vector<16x128xf32>
    %c0_1 = arith.constant 0 : index
    %c0_2 = arith.constant 0 : index
    %1 = vector.load %arg1[%c0_1, %c0_2] : memref<16x128xf32, #tpu.memory_space<vmem>>, vector<16x128xf32>
    %2 = arith.truncf %1 : vector<16x128xf32> to vector<16x128xbf16>
    %c0_3 = arith.constant 0 : index
    %c0_4 = arith.constant 0 : index
    %3 = vector.load %arg2[%c0_3, %c0_4] : memref<128x128xbf16, #tpu.memory_space<vmem>>, vector<128x128xbf16>
    %cst = arith.constant dense<0.000000e+00> : vector<16x128xf32>
    %4 = tpu.matmul %2, %3, %cst {dimension_numbers = #tpu.dot_dimension_numbers<[1], [0], [0], [1], [0, 0, 1, 1], [], []>} : vector<16x128xbf16>, vector<128x128xbf16>, vector<16x128xf32> -> vector<16x128xf32>
    %c0_5 = arith.constant 0 : index
    %c0_6 = arith.constant 0 : index
    %5 = vector.load %arg3[%c0_5, %c0_6] : memref<1x128xf32, #tpu.memory_space<vmem>>, vector<1x128xf32>
    %6 = vector.broadcast %5 : vector<1x128xf32> to vector<16x128xf32>
    %7 = arith.addf %4, %6 : vector<16x128xf32>
    %cst_7 = arith.constant 0.000000e+00 : f32
    %8 = vector.broadcast %cst_7 : f32 to vector<16x128xf32>
    %9 = arith.maximumf %7, %8 : vector<16x128xf32>
    %10 = arith.truncf %9 : vector<16x128xf32> to vector<16x128xbf16>
    %c0_8 = arith.constant 0 : index
    %c0_9 = arith.constant 0 : index
    %11 = vector.load %arg4[%c0_8, %c0_9] : memref<128x128xbf16, #tpu.memory_space<vmem>>, vector<128x128xbf16>
    %cst_10 = arith.constant dense<0.000000e+00> : vector<16x128xf32>
    %12 = tpu.matmul %10, %11, %cst_10 {dimension_numbers = #tpu.dot_dimension_numbers<[1], [0], [0], [1], [0, 0, 1, 1], [], []>} : vector<16x128xbf16>, vector<128x128xbf16>, vector<16x128xf32> -> vector<16x128xf32>
    %c0_11 = arith.constant 0 : index
    %c0_12 = arith.constant 0 : index
    %13 = vector.load %arg5[%c0_11, %c0_12] : memref<1x128xf32, #tpu.memory_space<vmem>>, vector<1x128xf32>
    %14 = vector.broadcast %13 : vector<1x128xf32> to vector<16x128xf32>
    %15 = arith.addf %12, %14 : vector<16x128xf32>
    %16 = arith.addf %15, %0 : vector<16x128xf32>
    %17 = tpu.iota {dimensions = array<i32: 1>} : vector<16x128xi32>
    %c32_i32 = arith.constant 32 : i32
    %18 = vector.broadcast %c32_i32 : i32 to vector<16x128xi32>
    %19 = arith.cmpi slt, %17, %18 : vector<16x128xi32>
    %cst_13 = arith.constant 0.000000e+00 : f32
    %20 = vector.broadcast %cst_13 : f32 to vector<16x128xf32>
    %21 = arith.select %19, %16, %20 : vector<16x128xi1>, vector<16x128xf32>
    %cst_14 = arith.constant dense<0.000000e+00> : vector<16xf32>
    %22 = vector.multi_reduction <add>, %21, %cst_14 [1] : vector<16x128xf32> to vector<16xf32>
    %23 = vector.shape_cast %22 : vector<16xf32> to vector<16x1xf32>
    %cst_15 = arith.constant 3.125000e-02 : f32
    %24 = vector.broadcast %cst_15 : f32 to vector<16x1xf32>
    %25 = arith.mulf %23, %24 : vector<16x1xf32>
    %26 = vector.broadcast %25 : vector<16x1xf32> to vector<16x128xf32>
    %27 = arith.subf %21, %26 : vector<16x128xf32>
    %cst_16 = arith.constant 0.000000e+00 : f32
    %28 = vector.broadcast %cst_16 : f32 to vector<16x128xf32>
    %29 = arith.select %19, %27, %28 : vector<16x128xi1>, vector<16x128xf32>
    %30 = arith.mulf %29, %29 : vector<16x128xf32>
    %cst_17 = arith.constant dense<0.000000e+00> : vector<16xf32>
    %31 = vector.multi_reduction <add>, %30, %cst_17 [1] : vector<16x128xf32> to vector<16xf32>
    %32 = vector.shape_cast %31 : vector<16xf32> to vector<16x1xf32>
    %cst_18 = arith.constant 3.125000e-02 : f32
    %33 = vector.broadcast %cst_18 : f32 to vector<16x1xf32>
    %34 = arith.mulf %32, %33 : vector<16x1xf32>
    %cst_19 = arith.constant 9.99999974E-6 : f32
    %35 = vector.broadcast %cst_19 : f32 to vector<16x1xf32>
    %36 = arith.addf %34, %35 : vector<16x1xf32>
    %37 = math.rsqrt %36 : vector<16x1xf32>
    %38 = vector.broadcast %37 : vector<16x1xf32> to vector<16x128xf32>
    %39 = arith.mulf %29, %38 : vector<16x128xf32>
    %c0_20 = arith.constant 0 : index
    %c0_21 = arith.constant 0 : index
    %40 = vector.load %arg6[%c0_20, %c0_21] : memref<1x128xf32, #tpu.memory_space<vmem>>, vector<1x128xf32>
    %41 = vector.broadcast %40 : vector<1x128xf32> to vector<16x128xf32>
    %42 = arith.mulf %39, %41 : vector<16x128xf32>
    %c0_22 = arith.constant 0 : index
    %c0_23 = arith.constant 0 : index
    %43 = vector.load %arg7[%c0_22, %c0_23] : memref<1x128xf32, #tpu.memory_space<vmem>>, vector<1x128xf32>
    %44 = vector.broadcast %43 : vector<1x128xf32> to vector<16x128xf32>
    %45 = arith.addf %42, %44 : vector<16x128xf32>
    %c0_24 = arith.constant 0 : index
    %c0_25 = arith.constant 0 : index
    %46 = vector.load %arg8[%c0_24, %c0_25] : memref<16x128xf32, #tpu.memory_space<vmem>>, vector<16x128xf32>
    tpu.vector_store %arg8[%c0_24, %c0_25], %45 {strides = array<i32>} : memref<16x128xf32, #tpu.memory_space<vmem>>, vector<16x128xf32>,
    return
  }
  func.func @transform_0(%arg0: i32) -> (i32, i32) {
    %c0_i32 = arith.constant 0 : i32
    %c0_i32_0 = arith.constant 0 : i32
    return %arg0, %c0_i32 : i32, i32
  }
  func.func @transform_1(%arg0: i32) -> (i32, i32) {
    %c0_i32 = arith.constant 0 : i32
    %c0_i32_0 = arith.constant 0 : i32
    %c0_i32_1 = arith.constant 0 : i32
    return %c0_i32, %c0_i32_0 : i32, i32
  }
  func.func @transform_2(%arg0: i32) -> (i32, i32) {
    %c0_i32 = arith.constant 0 : i32
    %c0_i32_0 = arith.constant 0 : i32
    %c0_i32_1 = arith.constant 0 : i32
    return %c0_i32, %c0_i32_0 : i32, i32
  }
  func.func @transform_3(%arg0: i32) -> (i32, i32) {
    %c0_i32 = arith.constant 0 : i32
    %c0_i32_0 = arith.constant 0 : i32
    %c0_i32_1 = arith.constant 0 : i32
    return %c0_i32, %c0_i32_0 : i32, i32
  }
  func.func @transform_4(%arg0: i32) -> (i32, i32) {
    %c0_i32 = arith.constant 0 : i32
    %c0_i32_0 = arith.constant 0 : i32
    %c0_i32_1 = arith.constant 0 : i32
    return %c0_i32, %c0_i32_0 : i32, i32
  }
  func.func @transform_5(%arg0: i32) -> (i32, i32) {
    %c0_i32 = arith.constant 0 : i32
    %c0_i32_0 = arith.constant 0 : i32
    %c0_i32_1 = arith.constant 0 : i32
    return %c0_i32, %c0_i32_0 : i32, i32
  }
  func.func @transform_6(%arg0: i32) -> (i32, i32) {
    %c0_i32 = arith.constant 0 : i32
    %c0_i32_0 = arith.constant 0 : i32
    %c0_i32_1 = arith.constant 0 : i32
    return %c0_i32, %c0_i32_0 : i32, i32
  }
  func.func @transform_7(%arg0: i32) -> (i32, i32) {
    %c0_i32 = arith.constant 0 : i32
    %c0_i32_0 = arith.constant 0 : i32
    return %arg0, %c0_i32 : i32, i32
  }
}

</mosaic_0001>

<bundles_post_ra>
// kernel: tpu_custom_call.1
= control target key start
LH: loop header
LB: loop body
LE: loop exit
PB: predicated region body
PF: predicated region fallthrough
CT: control target
= control target key end

     0   :  { %12 = vsyncpa [#allocation3], 0  ;;  %s874_s0 = inlined_call_operand.hbm [shape: f32[16,128], index: 0, kind: input, shape index: {}]   ;;  %s875_s1 = inlined_call_operand.hbm [shape: bf16[128,128], index: 1, kind: input, shape index: {}]   ;;  %s876_s2 = inlined_call_operand.hbm [shape: f32[1,128], index: 2, kind: input, shape index: {}]   ;;  %s877_s3 = inlined_call_operand.hbm [shape: bf16[128,128], index: 3, kind: input, shape index: {}]   ;;  %s878_s4 = inlined_call_operand.hbm [shape: f32[1,128], index: 4, kind: input, shape index: {}]   ;;  %s879_s5 = inlined_call_operand.hbm [shape: f32[1,128], index: 5, kind: input, shape index: {}]   ;;  %s880_s6 = inlined_call_operand.hbm [shape: f32[1,128], index: 6, kind: input, shape index: {}]   ;;  %s881_s7 = inlined_call_operand.hbm [shape: f32[16,128], index: 7, kind: output, shape index: {}]  }
   0x1   :  { %13 = vsyncpa [#allocation6], 0 }
   0x2   :  { %14 = vsyncpa [#allocation9], 0 }
   0x3   :  { %15 = vsyncpa [#allocation12], 0 }
   0x4   :  { %16 = vsyncpa [#allocation4], 0  ;;  %s714_s24 = smov [#allocation5]   ;;  %s528_s28 = scalar_lea.hbm %s875_s1, 1024 }
   0x5   :  { %s34_s25 = sshll.u32 %s714_s24, 4  ;;  %p529_p0 = scmp.ne.s32.totalorder %s875_s1, %s528_s28  ;;  %s35_s25 = int_to_ptr.vmem [resolvable:$true] %s34_s25 }
   0x6   :  { %p532_p1 = scmp.lt.u32.totalorder %s528_s28, %s875_s1 }
   0x8   :  { %p534_p2 = pnand %p532_p1, %p529_p0 }
   0xa   :  { %537 = shalt.err (!%p534_p2)
}
   0xb   :  { %s538_s10 = scalar_lea.vmem %s35_s25, 1024  ;;  %p543_p4 = scmp.lt.s32.totalorder %s35_s25, %s35_s25 }
   0xc   :  { %p539_p3 = scmp.ne.s32.totalorder %s35_s25, %s538_s10  ;;  %p544_p5 = scmp.lt.s32.totalorder %s538_s10, %s538_s10 }
   0xe   :  { %p545_p6 = por %p544_p5, %p543_p4 }
  0x10   :  { %p546_p7 = pnand %p545_p6, %p539_p3 }
  0x12   :  { %549 = shalt.err (!%p546_p7)
}
  0x13   :  { %s715_s11 = smov 64   ;;  %s716_s12 = smov 4  }
  0x14   :  { %40 = dma.hbm_to_vmem [thread:$0]  %s875_s1, 1024, %s35_s25, [#allocation6], %s715_s11, %s715_s11, %s716_s12  }
  0x15   :  { %s717_s15 = smov [#allocation8]   ;;  %s718_s17 = smov [#allocation11]  }
  0x16   :  { %s56_s16 = sshll.u32 %s717_s15, 4  ;;  %s79_s18 = sshll.u32 %s718_s17, 4  ;;  %s57_s16 = int_to_ptr.vmem [resolvable:$true] %s56_s16  ;;  %s80_s18 = int_to_ptr.vmem [resolvable:$true] %s79_s18 }
  0x17   :  { %s550_s21 = scalar_lea.hbm %s877_s3, 1024 }
  0x18   :  { %p551_p8 = scmp.ne.s32.totalorder %s877_s3, %s550_s21  ;;  %p554_p9 = scmp.lt.u32.totalorder %s550_s21, %s877_s3 }
  0x1a   :  { %p556_p10 = pnand %p554_p9, %p551_p8 }
  0x1c   :  { %559 = shalt.err (!%p556_p10)
}
  0x1d   :  { %s560_s1 = scalar_lea.vmem %s57_s16, 1024  ;;  %p565_p12 = scmp.lt.s32.totalorder %s57_s16, %s57_s16 }
  0x1e   :  { %p561_p11 = scmp.ne.s32.totalorder %s57_s16, %s560_s1  ;;  %p566_p13 = scmp.lt.s32.totalorder %s560_s1, %s560_s1 }
  0x20   :  { %p567_p0 = por %p566_p13, %p565_p12 }
  0x22   :  { %p568_p1 = pnand %p567_p0, %p561_p11 }
  0x24   :  { %571 = shalt.err (!%p568_p1)
}
  0x25   :  { %62 = dma.hbm_to_vmem [thread:$0]  %s877_s3, 1024, %s57_s16, [#allocation9], %s715_s11, %s715_s11, %s716_s12  }
  0x26   :  { %s572_s30 = scalar_lea.hbm %s879_s5, 16 }
  0x27   :  { %p573_p2 = scmp.ne.s32.totalorder %s879_s5, %s572_s30  ;;  %p576_p3 = scmp.lt.u32.totalorder %s572_s30, %s879_s5 }
  0x29   :  { %p578_p4 = pnand %p576_p3, %p573_p2 }
  0x2b   :  { %581 = shalt.err (!%p578_p4)
}
  0x2c   :  { %s582_s14 = scalar_lea.vmem %s80_s18, 16  ;;  %s586_s15 = scalar_lea.vmem %s80_s18, 32 }
  0x2d   :  { %p583_p5 = scmp.ne.s32.totalorder %s80_s18, %s582_s14  ;;  %p587_p6 = scmp.lt.s32.totalorder %s80_s18, %s80_s18 }
  0x2e   :  { %p588_p7 = scmp.lt.s32.totalorder %s586_s15, %s582_s14 }
  0x30   :  { %p589_p8 = por %p588_p7, %p587_p6 }
  0x32   :  { %p590_p9 = pnand %p589_p8, %p583_p5 }
  0x34   :  { %593 = shalt.err (!%p590_p9)
}
  0x35   :  { %82 = dma.hbm_to_vmem [thread:$0]  %s879_s5, 16, %s80_s18, [#allocation12]  }
  0x36   :  { %s719_s12 = smov [#allocation2]   ;;  %s594_s20 = scalar_lea.hbm %s874_s0, 256 }
  0x37   :  { %s22_s16 = sshll.u32 %s719_s12, 4  ;;  %p595_p10 = scmp.ne.s32.totalorder %s874_s0, %s594_s20  ;;  %s23_s16 = int_to_ptr.vmem [resolvable:$true] %s22_s16 }
  0x38   :  { %p598_p11 = scmp.lt.u32.totalorder %s594_s20, %s874_s0 }
  0x3a   :  { %p600_p12 = pnand %p598_p11, %p595_p10 }
  0x3c   :  { %603 = shalt.err (!%p600_p12)
}
  0x3d   :  { %s604_s26 = scalar_lea.vmem %s23_s16, 256  ;;  %p609_p0 = scmp.lt.s32.totalorder %s23_s16, %s23_s16 }
  0x3e   :  { %p605_p13 = scmp.ne.s32.totalorder %s23_s16, %s604_s26  ;;  %p610_p1 = scmp.lt.s32.totalorder %s604_s26, %s604_s26 }
  0x40   :  { %p611_p2 = por %p610_p1, %p609_p0 }
  0x42   :  { %p612_p3 = pnand %p611_p2, %p605_p13 }
  0x44   :  { %615 = shalt.err (!%p612_p3)
}
  0x45   :  { %s720_s5 = smov 128   ;;  %s721_s18 = smov 8  }
  0x46   :  { %28 = dma.hbm_to_vmem [thread:$0]  %s874_s0, 256, %s23_s16, [#allocation3], %s720_s5, %s720_s5, %s721_s18  }
  0x47   :  { %s722_s27 = smov [#allocation7]   ;;  %s723_s29 = smov [#allocation10]  }
  0x48   :  { %s47_s28 = sshll.u32 %s722_s27, 4  ;;  %s69_s30 = sshll.u32 %s723_s29, 4  ;;  %s48_s28 = int_to_ptr.vmem [resolvable:$true] %s47_s28  ;;  %s70_s30 = int_to_ptr.vmem [resolvable:$true] %s69_s30 }
  0x49   :  { %s616_s10 = scalar_lea.hbm %s876_s2, 16 }
  0x4a   :  { %p617_p4 = scmp.ne.s32.totalorder %s876_s2, %s616_s10  ;;  %p620_p5 = scmp.lt.u32.totalorder %s616_s10, %s876_s2 }
  0x4c   :  { %p622_p6 = pnand %p620_p5, %p617_p4 }
  0x4e   :  { %625 = shalt.err (!%p622_p6)
}
  0x4f   :  { %s626_s0 = scalar_lea.vmem %s48_s28, 16  ;;  %s630_s11 = scalar_lea.vmem %s48_s28, 32 }
  0x50   :  { %p627_p7 = scmp.ne.s32.totalorder %s48_s28, %s626_s0  ;;  %p631_p8 = scmp.lt.s32.totalorder %s48_s28, %s48_s28 }
  0x51   :  { %p632_p9 = scmp.lt.s32.totalorder %s630_s11, %s626_s0 }
  0x53   :  { %p633_p10 = por %p632_p9, %p631_p8 }
  0x55   :  { %p634_p11 = pnand %p633_p10, %p627_p7 }
  0x57   :  { %637 = shalt.err (!%p634_p11)
}
  0x58   :  { %50 = dma.hbm_to_vmem [thread:$0]  %s876_s2, 16, %s48_s28, [#allocation6]  }
  0x59   :  { %s638_s20 = scalar_lea.hbm %s878_s4, 16 }
  0x5a   :  { %p639_p12 = scmp.ne.s32.totalorder %s878_s4, %s638_s20  ;;  %p642_p13 = scmp.lt.u32.totalorder %s638_s20, %s878_s4 }
  0x5c   :  { %p644_p0 = pnand %p642_p13, %p639_p12 }
  0x5e   :  { %647 = shalt.err (!%p644_p0)
}
  0x5f   :  { %s648_s26 = scalar_lea.vmem %s70_s30, 16  ;;  %s652_s1 = scalar_lea.vmem %s70_s30, 32 }
  0x60   :  { %p649_p1 = scmp.ne.s32.totalorder %s70_s30, %s648_s26  ;;  %p653_p2 = scmp.lt.s32.totalorder %s70_s30, %s70_s30 }
  0x61   :  { %p654_p3 = scmp.lt.s32.totalorder %s652_s1, %s648_s26 }
  0x63   :  { %p655_p4 = por %p654_p3, %p653_p2 }
  0x65   :  { %p656_p5 = pnand %p655_p4, %p649_p1 }
  0x67   :  { %659 = shalt.err (!%p656_p5)
}
  0x68   :  { %72 = dma.hbm_to_vmem [thread:$0]  %s878_s4, 16, %s70_s30, [#allocation9]  }
  0x69   :  { %s724_s27 = smov [#allocation13]   ;;  %s660_s9 = scalar_lea.hbm %s880_s6, 16 }
  0x6a   :  { %s89_s28 = sshll.u32 %s724_s27, 4  ;;  %p661_p6 = scmp.ne.s32.totalorder %s880_s6, %s660_s9  ;;  %s90_s28 = int_to_ptr.vmem [resolvable:$true] %s89_s28 }
  0x6b   :  { %p664_p7 = scmp.lt.u32.totalorder %s660_s9, %s880_s6 }
  0x6d   :  { %p666_p8 = pnand %p664_p7, %p661_p6 }
  0x6f   :  { %669 = shalt.err (!%p666_p8)
}
  0x70   :  { %s670_s3 = scalar_lea.vmem %s90_s28, 16  ;;  %s674_s4 = scalar_lea.vmem %s90_s28, 32 }
  0x71   :  { %p671_p9 = scmp.ne.s32.totalorder %s90_s28, %s670_s3  ;;  %p675_p10 = scmp.lt.s32.totalorder %s90_s28, %s90_s28 }
  0x72   :  { %p676_p11 = scmp.lt.s32.totalorder %s674_s4, %s670_s3 }
  0x74   :  { %p677_p12 = por %p676_p11, %p675_p10 }
  0x76   :  { %p678_p13 = pnand %p677_p12, %p671_p9 }
  0x78   :  { %681 = shalt.err (!%p678_p13)
}
  0x79   :  { %92 = dma.hbm_to_vmem [thread:$0]  %s880_s6, 16, %s90_s28, [#allocation12]  }
  0x7a   :  { %704 = dma.done.wait [#allocation3], 256  }
  0x7b   :  { %705 = vsyncadd [#allocation3], 4294967040 }
  0x7c   :  { %706 = dma.done.wait [#allocation6], 1040  }
  0x7d   :  { %707 = vsyncadd [#allocation6], 4294966256 }
  0x7e   :  { %708 = dma.done.wait [#allocation9], 1040  }
  0x7f   :  { %709 = vsyncadd [#allocation9], 4294966256 }
  0x80   :  { %710 = dma.done.wait [#allocation12], 32  }
  0x81   :  { %711 = vsyncadd [#allocation12], 4294967264  ;;  %v725_v0 = vmov 0.0   ;;  %vm726_vm0 = vmmov 0   ;;  %v508_v1 = vld [vmem:[#allocation5] sm:$0xff]   ;;  %v509_v2 = vld [vmem:[#allocation5 + $0x8] sm:$0xff]   ;;  %v347_v30 = vlaneseq }
  0x82   :  { %454 = vmatprep.subr.bf16.mxu0 %v725_v0  ;;  %470 = vmatprep.mubr.msk.bf16.mxu0 %vm726_vm0, %v725_v0  ;;  %v510_v3 = vld [vmem:[#allocation5 + $0x10] sm:$0xff]   ;;  %v516_v4 = vld [vmem:[#allocation8] sm:$0xff]   ;;  %v511_v5 = vld [vmem:[#allocation5 + $0x18] sm:$0xff]   ;;  %s727_s6 = smov [#allocation14]  }
  0x83   :  { %474 = vmatprep.subr.bf16.mxu1 %v725_v0  ;;  %490 = vmatprep.mubr.msk.bf16.mxu1 %vm726_vm0, %v725_v0  ;;  %v517_v6 = vld [vmem:[#allocation8 + $0x8] sm:$0xff]   ;;  %v512_v7 = vld [vmem:[#allocation5 + $0x20] sm:$0xff]   ;;  %v518_v8 = vld [vmem:[#allocation8 + $0x10] sm:$0xff]   ;;  %v348_v32 = vand.u32 127, %v347_v30  ;;  %s401_s11 = sshll.u32 %s727_s6, 4  ;;  %s402_s11 = int_to_ptr.vmem [resolvable:$true] %s401_s11 }
  0x84   :  { %455 = vmatpush3.bf16.msra.mxu0 %v508_v1  ;;  %475 = vmatpush3.bf16.msra.mxu1 %v516_v4  ;;  %v513_v9 = vld [vmem:[#allocation5 + $0x28] sm:$0xff]   ;;  %v519_v10 = vld [vmem:[#allocation8 + $0x18] sm:$0xff]   ;;  %v514_v11 = vld [vmem:[#allocation5 + $0x30] sm:$0xff]   ;;  %s682_s12 = scalar_lea.vmem %s402_s11, 256  ;;  %p687_p1 = scmp.lt.s32.totalorder %s402_s11, %s402_s11 }
  0x85   :  { %456 = vmatprep.subr.bf16.mxu0 %v725_v0  ;;  %476 = vmatprep.subr.bf16.mxu1 %v725_v0  ;;  %v520_v12 = vld [vmem:[#allocation8 + $0x20] sm:$0xff]   ;;  %v515_v13 = vld [vmem:[#allocation5 + $0x38] sm:$0xff]   ;;  %v115_v14 = vld [vmem:[#allocation2] sm:$0xff]  ;;  %vm349_vm1 = vcmp.lt.s32.totalorder %v348_v32, 32  ;;  %p683_p0 = scmp.ne.s32.totalorder %s402_s11, %s682_s12  ;;  %p688_p2 = scmp.lt.s32.totalorder %s682_s12, %s682_s12 }
  0x86   :  { %v116_v15 = vld [vmem:[#allocation2 + $0x8] sm:$0xff]  ;;  %v521_v16 = vld [vmem:[#allocation8 + $0x28] sm:$0xff]   ;;  %v416_v20 = vld [vmem:[#allocation7] ss:$0 sm:$0xff] }
  0x87   :  { %v117_v17 = vpack.c.bf16 %v116_v15, %v115_v14  ;;  %v522_v18 = vld [vmem:[#allocation8 + $0x30] sm:$0xff]   ;;  %v523_v19 = vld [vmem:[#allocation8 + $0x38] sm:$0xff]   ;;  %v425_v31 = vld [vmem:[#allocation10] ss:$0 sm:$0xff]  ;;  %p689_p3 = por %p688_p2, %p687_p1 }
  0x88   :  { %457 = vmatpush3.bf16.msra.mxu0 %v509_v2  ;;  %477 = vmatpush3.bf16.msra.mxu1 %v517_v6  ;;  %v434_v60 = vld [vmem:[#allocation11] ss:$0 sm:$0xff]  ;;  %v435_v62 = vld [vmem:[#allocation13] ss:$0 sm:$0xff] }
  0x89   :  { %458 = vmatprep.subr.bf16.mxu0 %v725_v0  ;;  %478 = vmatprep.subr.bf16.mxu1 %v725_v0  ;;  %p690_p4 = pnand %p689_p3, %p683_p0 }
  0x8c   :  { %459 = vmatpush3.bf16.msra.mxu0 %v510_v3  ;;  %479 = vmatpush3.bf16.msra.mxu1 %v518_v8 }
  0x8d   :  { %460 = vmatprep.subr.bf16.mxu0 %v725_v0  ;;  %480 = vmatprep.subr.bf16.mxu1 %v725_v0 }
  0x90   :  { %461 = vmatpush3.bf16.msra.mxu0 %v511_v5  ;;  %481 = vmatpush3.bf16.msra.mxu1 %v519_v10 }
  0x91   :  { %462 = vmatprep.subr.bf16.mxu0 %v725_v0  ;;  %482 = vmatprep.subr.bf16.mxu1 %v725_v0 }
  0x94   :  { %463 = vmatpush3.bf16.msra.mxu0 %v512_v7  ;;  %483 = vmatpush3.bf16.msra.mxu1 %v520_v12 }
  0x95   :  { %464 = vmatprep.subr.bf16.mxu0 %v725_v0  ;;  %484 = vmatprep.subr.bf16.mxu1 %v725_v0 }
  0x98   :  { %465 = vmatpush3.bf16.msra.mxu0 %v513_v9  ;;  %485 = vmatpush3.bf16.msra.mxu1 %v521_v16 }
  0x99   :  { %466 = vmatprep.subr.bf16.mxu0 %v725_v0  ;;  %486 = vmatprep.subr.bf16.mxu1 %v725_v0 }
  0x9c   :  { %467 = vmatpush3.bf16.msra.mxu0 %v514_v11  ;;  %487 = vmatpush3.bf16.msra.mxu1 %v522_v18 }
  0x9d   :  { %468 = vmatprep.subr.bf16.mxu0 %v725_v0  ;;  %488 = vmatprep.subr.bf16.mxu1 %v725_v0 }
  0xa0   :  { %469 = vmatpush3.bf16.msra.mxu0 %v515_v13  ;;  %489 = vmatpush3.bf16.msra.mxu1 %v523_v19 }
  0xa3   :  { %471 = vmatmul.mubr.bf16.vlgmr.msra.gmra.mrb[0].mxu0 %v117_v17 }
 0x176   :  { %v223_v21 = vpop.f32.mrb[0].mxu0 }
 0x177   :  { %v224_v22 = vadd.f32 %v416_v20, %v223_v21  ;;  %v472_v23 = vpop.f32.mrb[1].mxu0 }
 0x178   :  { %v226_v24 = vpop.f32.mrb[2].mxu0 }
 0x179   :  { %v227_v25 = vadd.f32 %v416_v20, %v226_v24  ;;  %v473_v26 = vpop.f32.mrb[3].mxu0  ;;  %v230_v27 = vmax.f32 %v224_v22, 0.0 }
 0x17b   :  { %v231_v28 = vmax.f32 %v227_v25, 0.0 }
 0x17d   :  { %v232_v29 = vpack.c.bf16 %v231_v28, %v230_v27 }
 0x17f   :  { %491 = vmatmul.mubr.bf16.vlgmr.msra.gmra.mrb[0].mxu1 %v232_v29 }
 0x252   :  { %v338_v33 = vpop.f32.mrb[0].mxu1 }
 0x253   :  { %v339_v34 = vadd.f32 %v425_v31, %v338_v33  ;;  %v492_v35 = vpop.f32.mrb[1].mxu1 }
 0x254   :  { %v341_v36 = vpop.f32.mrb[2].mxu1 }
 0x255   :  { %v342_v37 = vadd.f32 %v425_v31, %v341_v36  ;;  %v493_v38 = vpop.f32.mrb[3].mxu1  ;;  %v345_v39 = vadd.f32 %v339_v34, %v115_v14 }
 0x257   :  { %v350_v40 = vsel %vm349_vm1, %v345_v39, 0.0  ;;  %v346_v41 = vadd.f32 %v342_v37, %v116_v15 }
 0x258   :  { %352 = vadd.xlane.f32.xlu0 %v350_v40 }
 0x259   :  { %v351_v42 = vsel %vm349_vm1, %v346_v41, 0.0 }
 0x25c   :  { %354 = vadd.xlane.f32.xlu0 %v351_v42 }
 0x2e5   :  { %v353_v43 = vpop.xlane.xlu0 %352 }
 0x2e6   :  { %v356_v44 = vmul.f32 0.03125, %v353_v43 }
 0x2e8   :  { %v358_v45 = vsub.f32 %v350_v40, %v356_v44 }
 0x2e9   :  { %v355_v46 = vpop.xlane.xlu0 %354 }
 0x2ea   :  { %v357_v47 = vmul.f32 0.03125, %v355_v46  ;;  %v360_v48 = vsel %vm349_vm1, %v358_v45, 0.0 }
 0x2eb   :  { %v362_v49 = vmul.f32 %v360_v48, %v360_v48 }
 0x2ec   :  { %v359_v50 = vsub.f32 %v351_v42, %v357_v47 }
 0x2ed   :  { %364 = vadd.xlane.f32.xlu1 %v362_v49 }
 0x2ee   :  { %v361_v51 = vsel %vm349_vm1, %v359_v50, 0.0 }
 0x2ef   :  { %v363_v52 = vmul.f32 %v361_v51, %v361_v51 }
 0x2f1   :  { %366 = vadd.xlane.f32.xlu1 %v363_v52 }
 0x37a   :  { %v365_v53 = vpop.xlane.xlu1 %364 }
 0x37b   :  { %v368_v54 = vmul.f32 0.03125, %v365_v53 }
 0x37d   :  { %v370_v55 = vadd.f32 1e-05, %v368_v54 }
 0x37e   :  { %v367_v56 = vpop.xlane.xlu1 %366 }
 0x37f   :  { %524 = vrsqrt.f32 %v370_v55  ;;  %v369_v57 = vmul.f32 0.03125, %v367_v56 }
 0x381   :  { %v371_v58 = vadd.f32 1e-05, %v369_v57 }
 0x383   :  { %526 = vrsqrt.f32 %v371_v58 }
 0x389   :  { %v525_v59 = vpop.eup %524 }
 0x38a   :  { %v374_v61 = vmul.f32 %v525_v59, %v360_v48 }
 0x38c   :  { %v383_v63 = vmul.f32 %v434_v60, %v374_v61 }
 0x38d   :  { %v527_v0 = vpop.eup %526 }
 0x38e   :  { %v375_v1 = vmul.f32 %v527_v0, %v361_v51  ;;  %v392_v2 = vadd.f32 %v435_v62, %v383_v63 }
 0x390   :  { %v384_v3 = vmul.f32 %v434_v60, %v375_v1  ;;  %394 = vst [vmem:[#allocation14] sm:$0xff] %v392_v2 }
 0x392   :  { %v393_v4 = vadd.f32 %v435_v62, %v384_v3 }
 0x394   :  { %395 = vst [vmem:[#allocation14 + $0x8] sm:$0xff] %v393_v4 }
 0x395   :  { %693 = shalt.err (!%p690_p4)
}
 0x396   :  { %s694_s19 = scalar_lea.hbm %s881_s7, 256 }
 0x397   :  { %p695_p5 = scmp.ne.s32.totalorder %s881_s7, %s694_s19  ;;  %p698_p6 = scmp.lt.u32.totalorder %s694_s19, %s881_s7 }
 0x399   :  { %p700_p7 = pnand %p698_p6, %p695_p5 }
 0x39b   :  { %703 = shalt.err (!%p700_p7)
}
 0x39c   :  { %407 = dma.vmem_to_hbm [thread:$0]  %s402_s11, 256, %s881_s7, [#allocation4], %s720_s5, %s720_s5, %s721_s18  }
 0x39d   :  { %712 = dma.done.wait [#allocation4], 256  }
 0x39e   :  { %713 = vsyncadd [#allocation4], 4294967040 }
 0x39f   :  { %411 = vsyncpa [#allocation3], 1 }
 0x3a0   :  { %412 = vsyncpa [#allocation6], 1 }
 0x3a1   :  { %413 = vsyncpa [#allocation9], 1 }
 0x3a2   :  { %414 = vsyncpa [#allocation12], 1 }
 0x3a3   :  { %415 = vsyncpa [#allocation4], 1 }

</bundles_post_ra>
